<compile_context>
chip_gen: v7x
topology: tpu7x:2x2x1
jax: 0.10.0
libtpu: 0.0.40
codegen_flags: <defaults>
</compile_context>

<pallas_src>
import functools

import jax
import jax.numpy as jnp
from jax import lax
from jax.experimental import pallas as pl
from jax.experimental.pallas import tpu as pltpu

_LANE = 128               # batch elements per lane row
_STRIP = 8                # sublane rows per inner strip (1 f32 vreg per slab)
_UNROLL = 2               # inner strip-loop unroll factor
_UNIT = _STRIP * _UNROLL  # tile_r granularity (keeps n_strips % _UNROLL == 0)


def _dndt_kernel(num_bins, inv_temp, x_ref, b_ref, score_ref, out_ref):
    """DNDT forward for one batch-row tile.

    x_ref:     (F, TILE_R, 128) VMEM f32 -- batch folded into (sublane, lane)
    b_ref:     (F, max_nb)      SMEM f32 -- cumsum bias, pre-scaled by 1/T
    score_ref: (num_leaf, C)    SMEM f32
    out_ref:   (C, TILE_R, 128) VMEM f32
    """
    num_feat = len(num_bins)
    num_class = out_ref.shape[0]
    tile_r = out_ref.shape[1]
    n_strips = tile_r // _STRIP
    nb_last = num_bins[-1]
    num_leaf = 1
    for nb in num_bins:
        num_leaf *= nb

    # Hoist every SMEM scalar read out of the strip loop (loop-invariant).
    bias = [[b_ref[d, k] for k in range(num_bins[d])] for d in range(num_feat)]
    score = [[score_ref[j, c] for c in range(num_class)]
             for j in range(num_leaf)]

    def strip_body(s, carry):
        r0 = pl.multiple_of(s * _STRIP, _STRIP)
        rsl = pl.ds(r0, _STRIP)

        prefix = None       # unnormalized kron of features 0 .. F-2
        p_last = None       # unnormalized softmax exps of the last feature
        s_prod = None       # product of per-feature softmax denominators
        for d in range(num_feat):
            nb = num_bins[d]
            xd = x_ref[d, rsl, :]                              # (STRIP, 128)
            # h_k = x*(k+1)/T + b[d,k]/T (both 1/T scales folded at trace time
            # / in the wrapper).  Runtime max keeps exp in range for any input.
            # TODO(synk): with a guaranteed input range the max chain could be
            # replaced by a trace-time bound folded into b_packed.
            hs = [xd * float((k + 1) * inv_temp) + bias[d][k]
                  for k in range(nb)]
            m = hs[0]
            for k in range(1, nb):
                m = jnp.maximum(m, hs[k])
            es = [jnp.exp(h - m) for h in hs]                  # EUP slot
            sd = es[0]
            for k in range(1, nb):
                sd = sd + es[k]
            s_prod = sd if s_prod is None else s_prod * sd
            if d + 1 < num_feat:
                prefix = es if prefix is None else [lj * ek for lj in prefix
                                                    for ek in es]
            else:
                p_last = es
        if prefix is None:                     # single-feature tree
            prefix = [None]

        # Fused last kron level + leaf-score contraction: each leaf slab dies
        # immediately, so only the prefix (num_leaf/nb_last slabs), p_last and
        # the C accumulators stay live -> fits in the vreg file, no spills.
        acc = [None] * num_class
        for j, lj in enumerate(prefix):
            for k in range(nb_last):
                leaf = p_last[k] if lj is None else lj * p_last[k]
                sc = score[j * nb_last + k]
                for c in range(num_class):
                    t = leaf * sc[c]
                    acc[c] = t if acc[c] is None else acc[c] + t

        # Deferred softmax normalization: one reciprocal of prod_d(sum_d)
        # applied to the C outputs instead of nb_d multiplies per feature.
        inv = pl.reciprocal(s_prod, approx=True)               # EUP slot
        for c in range(num_class):
            out_ref[c, rsl, :] = acc[c] * inv
        return carry

    lax.fori_loop(0, n_strips, strip_body, 0, unroll=_UNROLL)


def _pick_tile_rows(rows_u, cap_rows):
    """Largest useful tile (in rows, multiple of _UNIT).

    Prefers >=2 grid steps (v7x has two TensorCores) and >=4/8 steps for
    pipelining, but never lets a step shrink below 128 rows, where the
    ~600-cycle per-step pipeline overhead starts to rival the compute."""
    tile = min(1024, cap_rows, rows_u)
    for steps in (8, 4, 2):
        cand = -(-rows_u // (steps * _UNIT)) * _UNIT
        if 128 <= cand <= tile:
            return cand
    return max(_UNIT, tile)


def dndt_forward(x, cut_points_list, leaf_score, temperature):
    """Pallas implementation of DNDT.nn_decision_tree (forward pass)."""
    n, num_feat = x.shape
    num_class = leaf_score.shape[1]
    temperature = float(temperature)
    inv_temp = 1.0 / temperature

    # --- parameter preprocessing (tiny: sort, cumsum, 1/T fold, packing) ---
    num_bins = [int(cp.shape[0]) + 1 for cp in cut_points_list]
    max_nb = max(num_bins)
    num_leaf = 1
    for nb in num_bins:
        num_leaf *= nb

    b_rows = []
    for cp, nb in zip(cut_points_list, num_bins):
        cps = jnp.sort(cp.astype(jnp.float32))
        b = jnp.cumsum(jnp.concatenate([jnp.zeros((1,), jnp.float32), -cps]))
        b_rows.append(jnp.pad(b * inv_temp, (0, max_nb - nb)))
    b_packed = jnp.stack(b_rows, axis=0)      # (F, max_nb); padding never read

    # --- batch tiling: batch -> (rows, 128) with batch on the lane axis ---
    rows = -(-n // _LANE)
    rows_u = -(-rows // _UNIT) * _UNIT
    # VMEM budget: double-buffered input + output pipeline blocks kept under
    # ~16 MiB, well inside v7x's 64 MiB physical / 32 MiB scoped default.
    bytes_per_row = (num_feat + num_class) * _LANE * 4 * 2
    cap_rows = max(_UNIT,
                   ((16 * 1024 * 1024) // bytes_per_row) // _UNIT * _UNIT)
    tile_r = _pick_tile_rows(rows_u, cap_rows)
    grid_steps = -(-rows_u // tile_r)
    rows_pad = grid_steps * tile_r
    n_pad = rows_pad * _LANE

    # Layout plumbing; under jit these fuse into the pallas call's input
    # (allow_input_fusion below) so they do not cost an extra HBM round-trip.
    xp = jnp.pad(x.astype(jnp.float32), ((0, n_pad - n), (0, 0)))
    x3 = xp.T.reshape(num_feat, rows_pad, _LANE)   # x3[f, r, l] = x[r*128+l, f]

    kernel = functools.partial(_dndt_kernel, tuple(num_bins), inv_temp)

    # Advisory cost estimate for the XLA scheduler.
    valu = sum(4 * nb - 2 for nb in num_bins) + (num_feat - 1) + num_class
    run = num_bins[0]
    for nb in num_bins[1:-1]:
        valu += run * nb
        run *= nb
    valu += num_leaf * (1 + 2 * num_class)
    eup = sum(num_bins) + 1
    cost = pl.CostEstimate(
        flops=int(n_pad) * int(valu),
        transcendentals=int(n_pad) * int(eup),
        bytes_accessed=int(n_pad) * (num_feat + num_class) * 4)

    out3 = pl.pallas_call(
        kernel,
        out_shape=jax.ShapeDtypeStruct((num_class, rows_pad, _LANE),
                                       jnp.float32),
        grid=(grid_steps,),
        in_specs=[
            pl.BlockSpec((num_feat, tile_r, _LANE), lambda i: (0, i, 0)),
            pl.BlockSpec(memory_space=pltpu.MemorySpace.SMEM),   # b_packed
            pl.BlockSpec(memory_space=pltpu.MemorySpace.SMEM),   # leaf_score
        ],
        out_specs=pl.BlockSpec((num_class, tile_r, _LANE),
                               lambda i: (0, i, 0)),
        compiler_params=pltpu.CompilerParams(
            dimension_semantics=("parallel",),
            vmem_limit_bytes=32 * 1024 * 1024,
            allow_input_fusion=[True, False, False]),
        cost_estimate=cost,
    )(x3, b_packed, leaf_score.astype(jnp.float32))

    # (C, rows_pad, 128) -> (n, C).  A consumer that accepts (C, N) directly
    # can skip this transpose entirely (layout note from the perf review).
    return out3.reshape(num_class, n_pad).T[:n]


def dndt_reference(x, cut_points_list, leaf_score, temperature):
    """Pure-JAX reference mirroring the PyTorch module exactly."""
    def bin_fn(xd, cp):
        d = cp.shape[0]
        w = jnp.linspace(1.0, d + 1.0, d + 1).reshape(1, -1)
        cp = jnp.sort(cp)
        b = jnp.cumsum(jnp.concatenate([jnp.zeros((1,)), -cp]))
        h = (xd @ w + b) / temperature
        return jax.nn.softmax(h, axis=1)

    leaf = None
    for d, cp in enumerate(cut_points_list):
        p = bin_fn(x[:, d:d + 1], cp)
        if leaf is None:
            leaf = p
        else:
            leaf = (leaf[:, :, None] * p[:, None, :]).reshape(x.shape[0], -1)
    return leaf @ leaf_score


if __name__ == "__main__":
    # Deterministic synthetic parameters (mirrors DNDT.__init__ shapes).
    num_cut = [1, 2, 1]          # one cut-point vector per input feature
    num_class = 3
    temperature = 0.1
    N = 8
    num_feat = len(num_cut)
    num_leaf = 1
    for c in num_cut:
        num_leaf *= (c + 1)      # = np.prod(np.array(num_cut) + 1) = 12

    key = jax.random.PRNGKey(0)
    keys = jax.random.split(key, num_feat + 2)
    cut_points_list = [
        jax.random.uniform(keys[i], (c,), jnp.float32)    # torch.rand([i])
        for i, c in enumerate(num_cut)
    ]
    leaf_score = jax.random.uniform(keys[-2], (num_leaf, num_class),
                                    jnp.float32)          # torch.rand
    x = jax.random.uniform(keys[-1], (N, num_feat), jnp.float32)

    fwd = jax.jit(dndt_forward, static_argnums=(3,))
    out = jax.block_until_ready(fwd(x, cut_points_list, leaf_score,
                                    temperature))

    ref = dndt_reference(x, cut_points_list, leaf_score, temperature)
    assert out.shape == (N, num_class)
    # Tolerance accounts for the approximate (EUP) reciprocal normalization.
    assert jnp.allclose(out, ref, atol=5e-3, rtol=5e-3), \
        float(jnp.max(jnp.abs(out - ref)))
    print("KERNEL_OK")
</pallas_src>

<mosaic_0001>
module attributes {stable_mosaic.version = 11 : i64} {
  func.func @_dndt_kernel(%arg0: i32, %arg1: memref<3x16x128xf32, #tpu.memory_space<vmem>>, %arg2: memref<3x3xf32, #tpu.memory_space<smem>>, %arg3: memref<12x3xf32, #tpu.memory_space<smem>>, %arg4: memref<3x16x128xf32, #tpu.memory_space<vmem>>) attributes {dimension_semantics = [#tpu.dimension_semantics<parallel>], iteration_bounds = array<i64: 1>, scalar_prefetch = 0 : i64, scratch_operands = 0 : i64, tpu.core_type = #tpu.core_type<tc>, window_params = [{transform_indices = @transform_0, window_bounds = array<i64: 3, 16, 128>}, {transform_indices = @transform_1, window_bounds = array<i64: 3, 3>}, {transform_indices = @transform_2, window_bounds = array<i64: 12, 3>}, {transform_indices = @transform_3, window_bounds = array<i64: 3, 16, 128>}]} {
    %c0 = arith.constant 0 : index
    %c0_0 = arith.constant 0 : index
    %0 = memref.load %arg2[%c0, %c0_0] : memref<3x3xf32, #tpu.memory_space<smem>>
    %c0_1 = arith.constant 0 : index
    %c1 = arith.constant 1 : index
    %1 = memref.load %arg2[%c0_1, %c1] : memref<3x3xf32, #tpu.memory_space<smem>>
    %c1_2 = arith.constant 1 : index
    %c0_3 = arith.constant 0 : index
    %2 = memref.load %arg2[%c1_2, %c0_3] : memref<3x3xf32, #tpu.memory_space<smem>>
    %c1_4 = arith.constant 1 : index
    %c1_5 = arith.constant 1 : index
    %3 = memref.load %arg2[%c1_4, %c1_5] : memref<3x3xf32, #tpu.memory_space<smem>>
    %c1_6 = arith.constant 1 : index
    %c2 = arith.constant 2 : index
    %4 = memref.load %arg2[%c1_6, %c2] : memref<3x3xf32, #tpu.memory_space<smem>>
    %c2_7 = arith.constant 2 : index
    %c0_8 = arith.constant 0 : index
    %5 = memref.load %arg2[%c2_7, %c0_8] : memref<3x3xf32, #tpu.memory_space<smem>>
    %c2_9 = arith.constant 2 : index
    %c1_10 = arith.constant 1 : index
    %6 = memref.load %arg2[%c2_9, %c1_10] : memref<3x3xf32, #tpu.memory_space<smem>>
    %c0_11 = arith.constant 0 : index
    %c0_12 = arith.constant 0 : index
    %7 = memref.load %arg3[%c0_11, %c0_12] : memref<12x3xf32, #tpu.memory_space<smem>>
    %c0_13 = arith.constant 0 : index
    %c1_14 = arith.constant 1 : index
    %8 = memref.load %arg3[%c0_13, %c1_14] : memref<12x3xf32, #tpu.memory_space<smem>>
    %c0_15 = arith.constant 0 : index
    %c2_16 = arith.constant 2 : index
    %9 = memref.load %arg3[%c0_15, %c2_16] : memref<12x3xf32, #tpu.memory_space<smem>>
    %c1_17 = arith.constant 1 : index
    %c0_18 = arith.constant 0 : index
    %10 = memref.load %arg3[%c1_17, %c0_18] : memref<12x3xf32, #tpu.memory_space<smem>>
    %c1_19 = arith.constant 1 : index
    %c1_20 = arith.constant 1 : index
    %11 = memref.load %arg3[%c1_19, %c1_20] : memref<12x3xf32, #tpu.memory_space<smem>>
    %c1_21 = arith.constant 1 : index
    %c2_22 = arith.constant 2 : index
    %12 = memref.load %arg3[%c1_21, %c2_22] : memref<12x3xf32, #tpu.memory_space<smem>>
    %c2_23 = arith.constant 2 : index
    %c0_24 = arith.constant 0 : index
    %13 = memref.load %arg3[%c2_23, %c0_24] : memref<12x3xf32, #tpu.memory_space<smem>>
    %c2_25 = arith.constant 2 : index
    %c1_26 = arith.constant 1 : index
    %14 = memref.load %arg3[%c2_25, %c1_26] : memref<12x3xf32, #tpu.memory_space<smem>>
    %c2_27 = arith.constant 2 : index
    %c2_28 = arith.constant 2 : index
    %15 = memref.load %arg3[%c2_27, %c2_28] : memref<12x3xf32, #tpu.memory_space<smem>>
    %c3 = arith.constant 3 : index
    %c0_29 = arith.constant 0 : index
    %16 = memref.load %arg3[%c3, %c0_29] : memref<12x3xf32, #tpu.memory_space<smem>>
    %c3_30 = arith.constant 3 : index
    %c1_31 = arith.constant 1 : index
    %17 = memref.load %arg3[%c3_30, %c1_31] : memref<12x3xf32, #tpu.memory_space<smem>>
    %c3_32 = arith.constant 3 : index
    %c2_33 = arith.constant 2 : index
    %18 = memref.load %arg3[%c3_32, %c2_33] : memref<12x3xf32, #tpu.memory_space<smem>>
    %c4 = arith.constant 4 : index
    %c0_34 = arith.constant 0 : index
    %19 = memref.load %arg3[%c4, %c0_34] : memref<12x3xf32, #tpu.memory_space<smem>>
    %c4_35 = arith.constant 4 : index
    %c1_36 = arith.constant 1 : index
    %20 = memref.load %arg3[%c4_35, %c1_36] : memref<12x3xf32, #tpu.memory_space<smem>>
    %c4_37 = arith.constant 4 : index
    %c2_38 = arith.constant 2 : index
    %21 = memref.load %arg3[%c4_37, %c2_38] : memref<12x3xf32, #tpu.memory_space<smem>>
    %c5 = arith.constant 5 : index
    %c0_39 = arith.constant 0 : index
    %22 = memref.load %arg3[%c5, %c0_39] : memref<12x3xf32, #tpu.memory_space<smem>>
    %c5_40 = arith.constant 5 : index
    %c1_41 = arith.constant 1 : index
    %23 = memref.load %arg3[%c5_40, %c1_41] : memref<12x3xf32, #tpu.memory_space<smem>>
    %c5_42 = arith.constant 5 : index
    %c2_43 = arith.constant 2 : index
    %24 = memref.load %arg3[%c5_42, %c2_43] : memref<12x3xf32, #tpu.memory_space<smem>>
    %c6 = arith.constant 6 : index
    %c0_44 = arith.constant 0 : index
    %25 = memref.load %arg3[%c6, %c0_44] : memref<12x3xf32, #tpu.memory_space<smem>>
    %c6_45 = arith.constant 6 : index
    %c1_46 = arith.constant 1 : index
    %26 = memref.load %arg3[%c6_45, %c1_46] : memref<12x3xf32, #tpu.memory_space<smem>>
    %c6_47 = arith.constant 6 : index
    %c2_48 = arith.constant 2 : index
    %27 = memref.load %arg3[%c6_47, %c2_48] : memref<12x3xf32, #tpu.memory_space<smem>>
    %c7 = arith.constant 7 : index
    %c0_49 = arith.constant 0 : index
    %28 = memref.load %arg3[%c7, %c0_49] : memref<12x3xf32, #tpu.memory_space<smem>>
    %c7_50 = arith.constant 7 : index
    %c1_51 = arith.constant 1 : index
    %29 = memref.load %arg3[%c7_50, %c1_51] : memref<12x3xf32, #tpu.memory_space<smem>>
    %c7_52 = arith.constant 7 : index
    %c2_53 = arith.constant 2 : index
    %30 = memref.load %arg3[%c7_52, %c2_53] : memref<12x3xf32, #tpu.memory_space<smem>>
    %c8 = arith.constant 8 : index
    %c0_54 = arith.constant 0 : index
    %31 = memref.load %arg3[%c8, %c0_54] : memref<12x3xf32, #tpu.memory_space<smem>>
    %c8_55 = arith.constant 8 : index
    %c1_56 = arith.constant 1 : index
    %32 = memref.load %arg3[%c8_55, %c1_56] : memref<12x3xf32, #tpu.memory_space<smem>>
    %c8_57 = arith.constant 8 : index
    %c2_58 = arith.constant 2 : index
    %33 = memref.load %arg3[%c8_57, %c2_58] : memref<12x3xf32, #tpu.memory_space<smem>>
    %c9 = arith.constant 9 : index
    %c0_59 = arith.constant 0 : index
    %34 = memref.load %arg3[%c9, %c0_59] : memref<12x3xf32, #tpu.memory_space<smem>>
    %c9_60 = arith.constant 9 : index
    %c1_61 = arith.constant 1 : index
    %35 = memref.load %arg3[%c9_60, %c1_61] : memref<12x3xf32, #tpu.memory_space<smem>>
    %c9_62 = arith.constant 9 : index
    %c2_63 = arith.constant 2 : index
    %36 = memref.load %arg3[%c9_62, %c2_63] : memref<12x3xf32, #tpu.memory_space<smem>>
    %c10 = arith.constant 10 : index
    %c0_64 = arith.constant 0 : index
    %37 = memref.load %arg3[%c10, %c0_64] : memref<12x3xf32, #tpu.memory_space<smem>>
    %c10_65 = arith.constant 10 : index
    %c1_66 = arith.constant 1 : index
    %38 = memref.load %arg3[%c10_65, %c1_66] : memref<12x3xf32, #tpu.memory_space<smem>>
    %c10_67 = arith.constant 10 : index
    %c2_68 = arith.constant 2 : index
    %39 = memref.load %arg3[%c10_67, %c2_68] : memref<12x3xf32, #tpu.memory_space<smem>>
    %c11 = arith.constant 11 : index
    %c0_69 = arith.constant 0 : index
    %40 = memref.load %arg3[%c11, %c0_69] : memref<12x3xf32, #tpu.memory_space<smem>>
    %c11_70 = arith.constant 11 : index
    %c1_71 = arith.constant 1 : index
    %41 = memref.load %arg3[%c11_70, %c1_71] : memref<12x3xf32, #tpu.memory_space<smem>>
    %c11_72 = arith.constant 11 : index
    %c2_73 = arith.constant 2 : index
    %42 = memref.load %arg3[%c11_72, %c2_73] : memref<12x3xf32, #tpu.memory_space<smem>>
    %c0_i32 = arith.constant 0 : i32
    %c8_i32 = arith.constant 8 : i32
    %43 = arith.muli %c0_i32, %c8_i32 : i32
    %44 = tpu.assume_multiple %43, 8 : i32
    %c0_74 = arith.constant 0 : index
    %45 = arith.index_cast %44 : i32 to index
    %c0_75 = arith.constant 0 : index
    %46 = vector.load %arg1[%c0_74, %45, %c0_75] : memref<3x16x128xf32, #tpu.memory_space<vmem>>, vector<1x8x128xf32>
    %47 = vector.shape_cast %46 : vector<1x8x128xf32> to vector<8x128xf32>
    %cst = arith.constant 1.000000e+01 : f32
    %48 = vector.broadcast %cst : f32 to vector<8x128xf32>
    %49 = arith.mulf %47, %48 : vector<8x128xf32>
    %50 = vector.broadcast %0 : f32 to vector<8x128xf32>
    %51 = arith.addf %49, %50 : vector<8x128xf32>
    %cst_76 = arith.constant 2.000000e+01 : f32
    %52 = vector.broadcast %cst_76 : f32 to vector<8x128xf32>
    %53 = arith.mulf %47, %52 : vector<8x128xf32>
    %54 = vector.broadcast %1 : f32 to vector<8x128xf32>
    %55 = arith.addf %53, %54 : vector<8x128xf32>
    %56 = arith.maximumf %51, %55 : vector<8x128xf32>
    %57 = arith.subf %51, %56 : vector<8x128xf32>
    %58 = math.exp %57 : vector<8x128xf32>
    %59 = arith.subf %55, %56 : vector<8x128xf32>
    %60 = math.exp %59 : vector<8x128xf32>
    %61 = arith.addf %58, %60 : vector<8x128xf32>
    %c1_77 = arith.constant 1 : index
    %62 = arith.index_cast %44 : i32 to index
    %c0_78 = arith.constant 0 : index
    %63 = vector.load %arg1[%c1_77, %62, %c0_78] : memref<3x16x128xf32, #tpu.memory_space<vmem>>, vector<1x8x128xf32>
    %64 = vector.shape_cast %63 : vector<1x8x128xf32> to vector<8x128xf32>
    %cst_79 = arith.constant 1.000000e+01 : f32
    %65 = vector.broadcast %cst_79 : f32 to vector<8x128xf32>
    %66 = arith.mulf %64, %65 : vector<8x128xf32>
    %67 = vector.broadcast %2 : f32 to vector<8x128xf32>
    %68 = arith.addf %66, %67 : vector<8x128xf32>
    %cst_80 = arith.constant 2.000000e+01 : f32
    %69 = vector.broadcast %cst_80 : f32 to vector<8x128xf32>
    %70 = arith.mulf %64, %69 : vector<8x128xf32>
    %71 = vector.broadcast %3 : f32 to vector<8x128xf32>
    %72 = arith.addf %70, %71 : vector<8x128xf32>
    %cst_81 = arith.constant 3.000000e+01 : f32
    %73 = vector.broadcast %cst_81 : f32 to vector<8x128xf32>
    %74 = arith.mulf %64, %73 : vector<8x128xf32>
    %75 = vector.broadcast %4 : f32 to vector<8x128xf32>
    %76 = arith.addf %74, %75 : vector<8x128xf32>
    %77 = arith.maximumf %68, %72 : vector<8x128xf32>
    %78 = arith.maximumf %77, %76 : vector<8x128xf32>
    %79 = arith.subf %68, %78 : vector<8x128xf32>
    %80 = math.exp %79 : vector<8x128xf32>
    %81 = arith.subf %72, %78 : vector<8x128xf32>
    %82 = math.exp %81 : vector<8x128xf32>
    %83 = arith.subf %76, %78 : vector<8x128xf32>
    %84 = math.exp %83 : vector<8x128xf32>
    %85 = arith.addf %80, %82 : vector<8x128xf32>
    %86 = arith.addf %85, %84 : vector<8x128xf32>
    %87 = arith.mulf %61, %86 : vector<8x128xf32>
    %88 = arith.mulf %58, %80 : vector<8x128xf32>
    %89 = arith.mulf %58, %82 : vector<8x128xf32>
    %90 = arith.mulf %58, %84 : vector<8x128xf32>
    %91 = arith.mulf %60, %80 : vector<8x128xf32>
    %92 = arith.mulf %60, %82 : vector<8x128xf32>
    %93 = arith.mulf %60, %84 : vector<8x128xf32>
    %c2_82 = arith.constant 2 : index
    %94 = arith.index_cast %44 : i32 to index
    %c0_83 = arith.constant 0 : index
    %95 = vector.load %arg1[%c2_82, %94, %c0_83] : memref<3x16x128xf32, #tpu.memory_space<vmem>>, vector<1x8x128xf32>
    %96 = vector.shape_cast %95 : vector<1x8x128xf32> to vector<8x128xf32>
    %cst_84 = arith.constant 1.000000e+01 : f32
    %97 = vector.broadcast %cst_84 : f32 to vector<8x128xf32>
    %98 = arith.mulf %96, %97 : vector<8x128xf32>
    %99 = vector.broadcast %5 : f32 to vector<8x128xf32>
    %100 = arith.addf %98, %99 : vector<8x128xf32>
    %cst_85 = arith.constant 2.000000e+01 : f32
    %101 = vector.broadcast %cst_85 : f32 to vector<8x128xf32>
    %102 = arith.mulf %96, %101 : vector<8x128xf32>
    %103 = vector.broadcast %6 : f32 to vector<8x128xf32>
    %104 = arith.addf %102, %103 : vector<8x128xf32>
    %105 = arith.maximumf %100, %104 : vector<8x128xf32>
    %106 = arith.subf %100, %105 : vector<8x128xf32>
    %107 = math.exp %106 : vector<8x128xf32>
    %108 = arith.subf %104, %105 : vector<8x128xf32>
    %109 = math.exp %108 : vector<8x128xf32>
    %110 = arith.addf %107, %109 : vector<8x128xf32>
    %111 = arith.mulf %87, %110 : vector<8x128xf32>
    %112 = arith.mulf %88, %107 : vector<8x128xf32>
    %113 = vector.broadcast %7 : f32 to vector<8x128xf32>
    %114 = arith.mulf %112, %113 : vector<8x128xf32>
    %115 = vector.broadcast %8 : f32 to vector<8x128xf32>
    %116 = arith.mulf %112, %115 : vector<8x128xf32>
    %117 = vector.broadcast %9 : f32 to vector<8x128xf32>
    %118 = arith.mulf %112, %117 : vector<8x128xf32>
    %119 = arith.mulf %88, %109 : vector<8x128xf32>
    %120 = vector.broadcast %10 : f32 to vector<8x128xf32>
    %121 = arith.mulf %119, %120 : vector<8x128xf32>
    %122 = arith.addf %114, %121 : vector<8x128xf32>
    %123 = vector.broadcast %11 : f32 to vector<8x128xf32>
    %124 = arith.mulf %119, %123 : vector<8x128xf32>
    %125 = arith.addf %116, %124 : vector<8x128xf32>
    %126 = vector.broadcast %12 : f32 to vector<8x128xf32>
    %127 = arith.mulf %119, %126 : vector<8x128xf32>
    %128 = arith.addf %118, %127 : vector<8x128xf32>
    %129 = arith.mulf %89, %107 : vector<8x128xf32>
    %130 = vector.broadcast %13 : f32 to vector<8x128xf32>
    %131 = arith.mulf %129, %130 : vector<8x128xf32>
    %132 = arith.addf %122, %131 : vector<8x128xf32>
    %133 = vector.broadcast %14 : f32 to vector<8x128xf32>
    %134 = arith.mulf %129, %133 : vector<8x128xf32>
    %135 = arith.addf %125, %134 : vector<8x128xf32>
    %136 = vector.broadcast %15 : f32 to vector<8x128xf32>
    %137 = arith.mulf %129, %136 : vector<8x128xf32>
    %138 = arith.addf %128, %137 : vector<8x128xf32>
    %139 = arith.mulf %89, %109 : vector<8x128xf32>
    %140 = vector.broadcast %16 : f32 to vector<8x128xf32>
    %141 = arith.mulf %139, %140 : vector<8x128xf32>
    %142 = arith.addf %132, %141 : vector<8x128xf32>
    %143 = vector.broadcast %17 : f32 to vector<8x128xf32>
    %144 = arith.mulf %139, %143 : vector<8x128xf32>
    %145 = arith.addf %135, %144 : vector<8x128xf32>
    %146 = vector.broadcast %18 : f32 to vector<8x128xf32>
    %147 = arith.mulf %139, %146 : vector<8x128xf32>
    %148 = arith.addf %138, %147 : vector<8x128xf32>
    %149 = arith.mulf %90, %107 : vector<8x128xf32>
    %150 = vector.broadcast %19 : f32 to vector<8x128xf32>
    %151 = arith.mulf %149, %150 : vector<8x128xf32>
    %152 = arith.addf %142, %151 : vector<8x128xf32>
    %153 = vector.broadcast %20 : f32 to vector<8x128xf32>
    %154 = arith.mulf %149, %153 : vector<8x128xf32>
    %155 = arith.addf %145, %154 : vector<8x128xf32>
    %156 = vector.broadcast %21 : f32 to vector<8x128xf32>
    %157 = arith.mulf %149, %156 : vector<8x128xf32>
    %158 = arith.addf %148, %157 : vector<8x128xf32>
    %159 = arith.mulf %90, %109 : vector<8x128xf32>
    %160 = vector.broadcast %22 : f32 to vector<8x128xf32>
    %161 = arith.mulf %159, %160 : vector<8x128xf32>
    %162 = arith.addf %152, %161 : vector<8x128xf32>
    %163 = vector.broadcast %23 : f32 to vector<8x128xf32>
    %164 = arith.mulf %159, %163 : vector<8x128xf32>
    %165 = arith.addf %155, %164 : vector<8x128xf32>
    %166 = vector.broadcast %24 : f32 to vector<8x128xf32>
    %167 = arith.mulf %159, %166 : vector<8x128xf32>
    %168 = arith.addf %158, %167 : vector<8x128xf32>
    %169 = arith.mulf %91, %107 : vector<8x128xf32>
    %170 = vector.broadcast %25 : f32 to vector<8x128xf32>
    %171 = arith.mulf %169, %170 : vector<8x128xf32>
    %172 = arith.addf %162, %171 : vector<8x128xf32>
    %173 = vector.broadcast %26 : f32 to vector<8x128xf32>
    %174 = arith.mulf %169, %173 : vector<8x128xf32>
    %175 = arith.addf %165, %174 : vector<8x128xf32>
    %176 = vector.broadcast %27 : f32 to vector<8x128xf32>
    %177 = arith.mulf %169, %176 : vector<8x128xf32>
    %178 = arith.addf %168, %177 : vector<8x128xf32>
    %179 = arith.mulf %91, %109 : vector<8x128xf32>
    %180 = vector.broadcast %28 : f32 to vector<8x128xf32>
    %181 = arith.mulf %179, %180 : vector<8x128xf32>
    %182 = arith.addf %172, %181 : vector<8x128xf32>
    %183 = vector.broadcast %29 : f32 to vector<8x128xf32>
    %184 = arith.mulf %179, %183 : vector<8x128xf32>
    %185 = arith.addf %175, %184 : vector<8x128xf32>
    %186 = vector.broadcast %30 : f32 to vector<8x128xf32>
    %187 = arith.mulf %179, %186 : vector<8x128xf32>
    %188 = arith.addf %178, %187 : vector<8x128xf32>
    %189 = arith.mulf %92, %107 : vector<8x128xf32>
    %190 = vector.broadcast %31 : f32 to vector<8x128xf32>
    %191 = arith.mulf %189, %190 : vector<8x128xf32>
    %192 = arith.addf %182, %191 : vector<8x128xf32>
    %193 = vector.broadcast %32 : f32 to vector<8x128xf32>
    %194 = arith.mulf %189, %193 : vector<8x128xf32>
    %195 = arith.addf %185, %194 : vector<8x128xf32>
    %196 = vector.broadcast %33 : f32 to vector<8x128xf32>
    %197 = arith.mulf %189, %196 : vector<8x128xf32>
    %198 = arith.addf %188, %197 : vector<8x128xf32>
    %199 = arith.mulf %92, %109 : vector<8x128xf32>
    %200 = vector.broadcast %34 : f32 to vector<8x128xf32>
    %201 = arith.mulf %199, %200 : vector<8x128xf32>
    %202 = arith.addf %192, %201 : vector<8x128xf32>
    %203 = vector.broadcast %35 : f32 to vector<8x128xf32>
    %204 = arith.mulf %199, %203 : vector<8x128xf32>
    %205 = arith.addf %195, %204 : vector<8x128xf32>
    %206 = vector.broadcast %36 : f32 to vector<8x128xf32>
    %207 = arith.mulf %199, %206 : vector<8x128xf32>
    %208 = arith.addf %198, %207 : vector<8x128xf32>
    %209 = arith.mulf %93, %107 : vector<8x128xf32>
    %210 = vector.broadcast %37 : f32 to vector<8x128xf32>
    %211 = arith.mulf %209, %210 : vector<8x128xf32>
    %212 = arith.addf %202, %211 : vector<8x128xf32>
    %213 = vector.broadcast %38 : f32 to vector<8x128xf32>
    %214 = arith.mulf %209, %213 : vector<8x128xf32>
    %215 = arith.addf %205, %214 : vector<8x128xf32>
    %216 = vector.broadcast %39 : f32 to vector<8x128xf32>
    %217 = arith.mulf %209, %216 : vector<8x128xf32>
    %218 = arith.addf %208, %217 : vector<8x128xf32>
    %219 = arith.mulf %93, %109 : vector<8x128xf32>
    %220 = vector.broadcast %40 : f32 to vector<8x128xf32>
    %221 = arith.mulf %219, %220 : vector<8x128xf32>
    %222 = arith.addf %212, %221 : vector<8x128xf32>
    %223 = vector.broadcast %41 : f32 to vector<8x128xf32>
    %224 = arith.mulf %219, %223 : vector<8x128xf32>
    %225 = arith.addf %215, %224 : vector<8x128xf32>
    %226 = vector.broadcast %42 : f32 to vector<8x128xf32>
    %227 = arith.mulf %219, %226 : vector<8x128xf32>
    %228 = arith.addf %218, %227 : vector<8x128xf32>
    %229 = tpu.reciprocal %111 {approx = true} : vector<8x128xf32> -> vector<8x128xf32>
    %230 = arith.mulf %222, %229 : vector<8x128xf32>
    %c0_86 = arith.constant 0 : index
    %231 = arith.index_cast %44 : i32 to index
    %c0_87 = arith.constant 0 : index
    %232 = vector.load %arg4[%c0_86, %231, %c0_87] : memref<3x16x128xf32, #tpu.memory_space<vmem>>, vector<1x8x128xf32>
    %233 = vector.shape_cast %232 : vector<1x8x128xf32> to vector<8x128xf32>
    %234 = vector.shape_cast %230 : vector<8x128xf32> to vector<1x8x128xf32>
    tpu.vector_store %arg4[%c0_86, %231, %c0_87], %234 {strides = array<i32>} : memref<3x16x128xf32, #tpu.memory_space<vmem>>, vector<1x8x128xf32>,
    %235 = arith.mulf %225, %229 : vector<8x128xf32>
    %c1_88 = arith.constant 1 : index
    %236 = arith.index_cast %44 : i32 to index
    %c0_89 = arith.constant 0 : index
    %237 = vector.load %arg4[%c1_88, %236, %c0_89] : memref<3x16x128xf32, #tpu.memory_space<vmem>>, vector<1x8x128xf32>
    %238 = vector.shape_cast %237 : vector<1x8x128xf32> to vector<8x128xf32>
    %239 = vector.shape_cast %235 : vector<8x128xf32> to vector<1x8x128xf32>
    tpu.vector_store %arg4[%c1_88, %236, %c0_89], %239 {strides = array<i32>} : memref<3x16x128xf32, #tpu.memory_space<vmem>>, vector<1x8x128xf32>,
    %240 = arith.mulf %228, %229 : vector<8x128xf32>
    %c2_90 = arith.constant 2 : index
    %241 = arith.index_cast %44 : i32 to index
    %c0_91 = arith.constant 0 : index
    %242 = vector.load %arg4[%c2_90, %241, %c0_91] : memref<3x16x128xf32, #tpu.memory_space<vmem>>, vector<1x8x128xf32>
    %243 = vector.shape_cast %242 : vector<1x8x128xf32> to vector<8x128xf32>
    %244 = vector.shape_cast %240 : vector<8x128xf32> to vector<1x8x128xf32>
    tpu.vector_store %arg4[%c2_90, %241, %c0_91], %244 {strides = array<i32>} : memref<3x16x128xf32, #tpu.memory_space<vmem>>, vector<1x8x128xf32>,
    %c1_i32 = arith.constant 1 : i32
    %c8_i32_92 = arith.constant 8 : i32
    %245 = arith.muli %c1_i32, %c8_i32_92 : i32
    %246 = tpu.assume_multiple %245, 8 : i32
    %c0_93 = arith.constant 0 : index
    %247 = arith.index_cast %246 : i32 to index
    %c0_94 = arith.constant 0 : index
    %248 = vector.load %arg1[%c0_93, %247, %c0_94] : memref<3x16x128xf32, #tpu.memory_space<vmem>>, vector<1x8x128xf32>
    %249 = vector.shape_cast %248 : vector<1x8x128xf32> to vector<8x128xf32>
    %cst_95 = arith.constant 1.000000e+01 : f32
    %250 = vector.broadcast %cst_95 : f32 to vector<8x128xf32>
    %251 = arith.mulf %249, %250 : vector<8x128xf32>
    %252 = vector.broadcast %0 : f32 to vector<8x128xf32>
    %253 = arith.addf %251, %252 : vector<8x128xf32>
    %cst_96 = arith.constant 2.000000e+01 : f32
    %254 = vector.broadcast %cst_96 : f32 to vector<8x128xf32>
    %255 = arith.mulf %249, %254 : vector<8x128xf32>
    %256 = vector.broadcast %1 : f32 to vector<8x128xf32>
    %257 = arith.addf %255, %256 : vector<8x128xf32>
    %258 = arith.maximumf %253, %257 : vector<8x128xf32>
    %259 = arith.subf %253, %258 : vector<8x128xf32>
    %260 = math.exp %259 : vector<8x128xf32>
    %261 = arith.subf %257, %258 : vector<8x128xf32>
    %262 = math.exp %261 : vector<8x128xf32>
    %263 = arith.addf %260, %262 : vector<8x128xf32>
    %c1_97 = arith.constant 1 : index
    %264 = arith.index_cast %246 : i32 to index
    %c0_98 = arith.constant 0 : index
    %265 = vector.load %arg1[%c1_97, %264, %c0_98] : memref<3x16x128xf32, #tpu.memory_space<vmem>>, vector<1x8x128xf32>
    %266 = vector.shape_cast %265 : vector<1x8x128xf32> to vector<8x128xf32>
    %cst_99 = arith.constant 1.000000e+01 : f32
    %267 = vector.broadcast %cst_99 : f32 to vector<8x128xf32>
    %268 = arith.mulf %266, %267 : vector<8x128xf32>
    %269 = vector.broadcast %2 : f32 to vector<8x128xf32>
    %270 = arith.addf %268, %269 : vector<8x128xf32>
    %cst_100 = arith.constant 2.000000e+01 : f32
    %271 = vector.broadcast %cst_100 : f32 to vector<8x128xf32>
    %272 = arith.mulf %266, %271 : vector<8x128xf32>
    %273 = vector.broadcast %3 : f32 to vector<8x128xf32>
    %274 = arith.addf %272, %273 : vector<8x128xf32>
    %cst_101 = arith.constant 3.000000e+01 : f32
    %275 = vector.broadcast %cst_101 : f32 to vector<8x128xf32>
    %276 = arith.mulf %266, %275 : vector<8x128xf32>
    %277 = vector.broadcast %4 : f32 to vector<8x128xf32>
    %278 = arith.addf %276, %277 : vector<8x128xf32>
    %279 = arith.maximumf %270, %274 : vector<8x128xf32>
    %280 = arith.maximumf %279, %278 : vector<8x128xf32>
    %281 = arith.subf %270, %280 : vector<8x128xf32>
    %282 = math.exp %281 : vector<8x128xf32>
    %283 = arith.subf %274, %280 : vector<8x128xf32>
    %284 = math.exp %283 : vector<8x128xf32>
    %285 = arith.subf %278, %280 : vector<8x128xf32>
    %286 = math.exp %285 : vector<8x128xf32>
    %287 = arith.addf %282, %284 : vector<8x128xf32>
    %288 = arith.addf %287, %286 : vector<8x128xf32>
    %289 = arith.mulf %263, %288 : vector<8x128xf32>
    %290 = arith.mulf %260, %282 : vector<8x128xf32>
    %291 = arith.mulf %260, %284 : vector<8x128xf32>
    %292 = arith.mulf %260, %286 : vector<8x128xf32>
    %293 = arith.mulf %262, %282 : vector<8x128xf32>
    %294 = arith.mulf %262, %284 : vector<8x128xf32>
    %295 = arith.mulf %262, %286 : vector<8x128xf32>
    %c2_102 = arith.constant 2 : index
    %296 = arith.index_cast %246 : i32 to index
    %c0_103 = arith.constant 0 : index
    %297 = vector.load %arg1[%c2_102, %296, %c0_103] : memref<3x16x128xf32, #tpu.memory_space<vmem>>, vector<1x8x128xf32>
    %298 = vector.shape_cast %297 : vector<1x8x128xf32> to vector<8x128xf32>
    %cst_104 = arith.constant 1.000000e+01 : f32
    %299 = vector.broadcast %cst_104 : f32 to vector<8x128xf32>
    %300 = arith.mulf %298, %299 : vector<8x128xf32>
    %301 = vector.broadcast %5 : f32 to vector<8x128xf32>
    %302 = arith.addf %300, %301 : vector<8x128xf32>
    %cst_105 = arith.constant 2.000000e+01 : f32
    %303 = vector.broadcast %cst_105 : f32 to vector<8x128xf32>
    %304 = arith.mulf %298, %303 : vector<8x128xf32>
    %305 = vector.broadcast %6 : f32 to vector<8x128xf32>
    %306 = arith.addf %304, %305 : vector<8x128xf32>
    %307 = arith.maximumf %302, %306 : vector<8x128xf32>
    %308 = arith.subf %302, %307 : vector<8x128xf32>
    %309 = math.exp %308 : vector<8x128xf32>
    %310 = arith.subf %306, %307 : vector<8x128xf32>
    %311 = math.exp %310 : vector<8x128xf32>
    %312 = arith.addf %309, %311 : vector<8x128xf32>
    %313 = arith.mulf %289, %312 : vector<8x128xf32>
    %314 = arith.mulf %290, %309 : vector<8x128xf32>
    %315 = vector.broadcast %7 : f32 to vector<8x128xf32>
    %316 = arith.mulf %314, %315 : vector<8x128xf32>
    %317 = vector.broadcast %8 : f32 to vector<8x128xf32>
    %318 = arith.mulf %314, %317 : vector<8x128xf32>
    %319 = vector.broadcast %9 : f32 to vector<8x128xf32>
    %320 = arith.mulf %314, %319 : vector<8x128xf32>
    %321 = arith.mulf %290, %311 : vector<8x128xf32>
    %322 = vector.broadcast %10 : f32 to vector<8x128xf32>
    %323 = arith.mulf %321, %322 : vector<8x128xf32>
    %324 = arith.addf %316, %323 : vector<8x128xf32>
    %325 = vector.broadcast %11 : f32 to vector<8x128xf32>
    %326 = arith.mulf %321, %325 : vector<8x128xf32>
    %327 = arith.addf %318, %326 : vector<8x128xf32>
    %328 = vector.broadcast %12 : f32 to vector<8x128xf32>
    %329 = arith.mulf %321, %328 : vector<8x128xf32>
    %330 = arith.addf %320, %329 : vector<8x128xf32>
    %331 = arith.mulf %291, %309 : vector<8x128xf32>
    %332 = vector.broadcast %13 : f32 to vector<8x128xf32>
    %333 = arith.mulf %331, %332 : vector<8x128xf32>
    %334 = arith.addf %324, %333 : vector<8x128xf32>
    %335 = vector.broadcast %14 : f32 to vector<8x128xf32>
    %336 = arith.mulf %331, %335 : vector<8x128xf32>
    %337 = arith.addf %327, %336 : vector<8x128xf32>
    %338 = vector.broadcast %15 : f32 to vector<8x128xf32>
    %339 = arith.mulf %331, %338 : vector<8x128xf32>
    %340 = arith.addf %330, %339 : vector<8x128xf32>
    %341 = arith.mulf %291, %311 : vector<8x128xf32>
    %342 = vector.broadcast %16 : f32 to vector<8x128xf32>
    %343 = arith.mulf %341, %342 : vector<8x128xf32>
    %344 = arith.addf %334, %343 : vector<8x128xf32>
    %345 = vector.broadcast %17 : f32 to vector<8x128xf32>
    %346 = arith.mulf %341, %345 : vector<8x128xf32>
    %347 = arith.addf %337, %346 : vector<8x128xf32>
    %348 = vector.broadcast %18 : f32 to vector<8x128xf32>
    %349 = arith.mulf %341, %348 : vector<8x128xf32>
    %350 = arith.addf %340, %349 : vector<8x128xf32>
    %351 = arith.mulf %292, %309 : vector<8x128xf32>
    %352 = vector.broadcast %19 : f32 to vector<8x128xf32>
    %353 = arith.mulf %351, %352 : vector<8x128xf32>
    %354 = arith.addf %344, %353 : vector<8x128xf32>
    %355 = vector.broadcast %20 : f32 to vector<8x128xf32>
    %356 = arith.mulf %351, %355 : vector<8x128xf32>
    %357 = arith.addf %347, %356 : vector<8x128xf32>
    %358 = vector.broadcast %21 : f32 to vector<8x128xf32>
    %359 = arith.mulf %351, %358 : vector<8x128xf32>
    %360 = arith.addf %350, %359 : vector<8x128xf32>
    %361 = arith.mulf %292, %311 : vector<8x128xf32>
    %362 = vector.broadcast %22 : f32 to vector<8x128xf32>
    %363 = arith.mulf %361, %362 : vector<8x128xf32>
    %364 = arith.addf %354, %363 : vector<8x128xf32>
    %365 = vector.broadcast %23 : f32 to vector<8x128xf32>
    %366 = arith.mulf %361, %365 : vector<8x128xf32>
    %367 = arith.addf %357, %366 : vector<8x128xf32>
    %368 = vector.broadcast %24 : f32 to vector<8x128xf32>
    %369 = arith.mulf %361, %368 : vector<8x128xf32>
    %370 = arith.addf %360, %369 : vector<8x128xf32>
    %371 = arith.mulf %293, %309 : vector<8x128xf32>
    %372 = vector.broadcast %25 : f32 to vector<8x128xf32>
    %373 = arith.mulf %371, %372 : vector<8x128xf32>
    %374 = arith.addf %364, %373 : vector<8x128xf32>
    %375 = vector.broadcast %26 : f32 to vector<8x128xf32>
    %376 = arith.mulf %371, %375 : vector<8x128xf32>
    %377 = arith.addf %367, %376 : vector<8x128xf32>
    %378 = vector.broadcast %27 : f32 to vector<8x128xf32>
    %379 = arith.mulf %371, %378 : vector<8x128xf32>
    %380 = arith.addf %370, %379 : vector<8x128xf32>
    %381 = arith.mulf %293, %311 : vector<8x128xf32>
    %382 = vector.broadcast %28 : f32 to vector<8x128xf32>
    %383 = arith.mulf %381, %382 : vector<8x128xf32>
    %384 = arith.addf %374, %383 : vector<8x128xf32>
    %385 = vector.broadcast %29 : f32 to vector<8x128xf32>
    %386 = arith.mulf %381, %385 : vector<8x128xf32>
    %387 = arith.addf %377, %386 : vector<8x128xf32>
    %388 = vector.broadcast %30 : f32 to vector<8x128xf32>
    %389 = arith.mulf %381, %388 : vector<8x128xf32>
    %390 = arith.addf %380, %389 : vector<8x128xf32>
    %391 = arith.mulf %294, %309 : vector<8x128xf32>
    %392 = vector.broadcast %31 : f32 to vector<8x128xf32>
    %393 = arith.mulf %391, %392 : vector<8x128xf32>
    %394 = arith.addf %384, %393 : vector<8x128xf32>
    %395 = vector.broadcast %32 : f32 to vector<8x128xf32>
    %396 = arith.mulf %391, %395 : vector<8x128xf32>
    %397 = arith.addf %387, %396 : vector<8x128xf32>
    %398 = vector.broadcast %33 : f32 to vector<8x128xf32>
    %399 = arith.mulf %391, %398 : vector<8x128xf32>
    %400 = arith.addf %390, %399 : vector<8x128xf32>
    %401 = arith.mulf %294, %311 : vector<8x128xf32>
    %402 = vector.broadcast %34 : f32 to vector<8x128xf32>
    %403 = arith.mulf %401, %402 : vector<8x128xf32>
    %404 = arith.addf %394, %403 : vector<8x128xf32>
    %405 = vector.broadcast %35 : f32 to vector<8x128xf32>
    %406 = arith.mulf %401, %405 : vector<8x128xf32>
    %407 = arith.addf %397, %406 : vector<8x128xf32>
    %408 = vector.broadcast %36 : f32 to vector<8x128xf32>
    %409 = arith.mulf %401, %408 : vector<8x128xf32>
    %410 = arith.addf %400, %409 : vector<8x128xf32>
    %411 = arith.mulf %295, %309 : vector<8x128xf32>
    %412 = vector.broadcast %37 : f32 to vector<8x128xf32>
    %413 = arith.mulf %411, %412 : vector<8x128xf32>
    %414 = arith.addf %404, %413 : vector<8x128xf32>
    %415 = vector.broadcast %38 : f32 to vector<8x128xf32>
    %416 = arith.mulf %411, %415 : vector<8x128xf32>
    %417 = arith.addf %407, %416 : vector<8x128xf32>
    %418 = vector.broadcast %39 : f32 to vector<8x128xf32>
    %419 = arith.mulf %411, %418 : vector<8x128xf32>
    %420 = arith.addf %410, %419 : vector<8x128xf32>
    %421 = arith.mulf %295, %311 : vector<8x128xf32>
    %422 = vector.broadcast %40 : f32 to vector<8x128xf32>
    %423 = arith.mulf %421, %422 : vector<8x128xf32>
    %424 = arith.addf %414, %423 : vector<8x128xf32>
    %425 = vector.broadcast %41 : f32 to vector<8x128xf32>
    %426 = arith.mulf %421, %425 : vector<8x128xf32>
    %427 = arith.addf %417, %426 : vector<8x128xf32>
    %428 = vector.broadcast %42 : f32 to vector<8x128xf32>
    %429 = arith.mulf %421, %428 : vector<8x128xf32>
    %430 = arith.addf %420, %429 : vector<8x128xf32>
    %431 = tpu.reciprocal %313 {approx = true} : vector<8x128xf32> -> vector<8x128xf32>
    %432 = arith.mulf %424, %431 : vector<8x128xf32>
    %c0_106 = arith.constant 0 : index
    %433 = arith.index_cast %246 : i32 to index
    %c0_107 = arith.constant 0 : index
    %434 = vector.load %arg4[%c0_106, %433, %c0_107] : memref<3x16x128xf32, #tpu.memory_space<vmem>>, vector<1x8x128xf32>
    %435 = vector.shape_cast %434 : vector<1x8x128xf32> to vector<8x128xf32>
    %436 = vector.shape_cast %432 : vector<8x128xf32> to vector<1x8x128xf32>
    tpu.vector_store %arg4[%c0_106, %433, %c0_107], %436 {strides = array<i32>} : memref<3x16x128xf32, #tpu.memory_space<vmem>>, vector<1x8x128xf32>,
    %437 = arith.mulf %427, %431 : vector<8x128xf32>
    %c1_108 = arith.constant 1 : index
    %438 = arith.index_cast %246 : i32 to index
    %c0_109 = arith.constant 0 : index
    %439 = vector.load %arg4[%c1_108, %438, %c0_109] : memref<3x16x128xf32, #tpu.memory_space<vmem>>, vector<1x8x128xf32>
    %440 = vector.shape_cast %439 : vector<1x8x128xf32> to vector<8x128xf32>
    %441 = vector.shape_cast %437 : vector<8x128xf32> to vector<1x8x128xf32>
    tpu.vector_store %arg4[%c1_108, %438, %c0_109], %441 {strides = array<i32>} : memref<3x16x128xf32, #tpu.memory_space<vmem>>, vector<1x8x128xf32>,
    %442 = arith.mulf %430, %431 : vector<8x128xf32>
    %c2_110 = arith.constant 2 : index
    %443 = arith.index_cast %246 : i32 to index
    %c0_111 = arith.constant 0 : index
    %444 = vector.load %arg4[%c2_110, %443, %c0_111] : memref<3x16x128xf32, #tpu.memory_space<vmem>>, vector<1x8x128xf32>
    %445 = vector.shape_cast %444 : vector<1x8x128xf32> to vector<8x128xf32>
    %446 = vector.shape_cast %442 : vector<8x128xf32> to vector<1x8x128xf32>
    tpu.vector_store %arg4[%c2_110, %443, %c0_111], %446 {strides = array<i32>} : memref<3x16x128xf32, #tpu.memory_space<vmem>>, vector<1x8x128xf32>,
    %c2_i32 = arith.constant 2 : i32
    return
  }
  func.func @transform_0(%arg0: i32) -> (i32, i32, i32) {
    %c0_i32 = arith.constant 0 : i32
    %c0_i32_0 = arith.constant 0 : i32
    %c0_i32_1 = arith.constant 0 : i32
    return %c0_i32, %arg0, %c0_i32_0 : i32, i32, i32
  }
  func.func @transform_1(%arg0: i32) -> (i32, i32) {
    %c0_i32 = arith.constant 0 : i32
    %c0_i32_0 = arith.constant 0 : i32
    %c0_i32_1 = arith.constant 0 : i32
    return %c0_i32, %c0_i32_0 : i32, i32
  }
  func.func @transform_2(%arg0: i32) -> (i32, i32) {
    %c0_i32 = arith.constant 0 : i32
    %c0_i32_0 = arith.constant 0 : i32
    %c0_i32_1 = arith.constant 0 : i32
    return %c0_i32, %c0_i32_0 : i32, i32
  }
  func.func @transform_3(%arg0: i32) -> (i32, i32, i32) {
    %c0_i32 = arith.constant 0 : i32
    %c0_i32_0 = arith.constant 0 : i32
    %c0_i32_1 = arith.constant 0 : i32
    return %c0_i32, %arg0, %c0_i32_0 : i32, i32, i32
  }
}

</mosaic_0001>

<bundles_post_ra>
// kernel: neg.4
= control target key start
LH: loop header
LB: loop body
LE: loop exit
PB: predicated region body
PF: predicated region fallthrough
CT: control target
= control target key end

     0   :  { %s24_s0 = inlined_call_operand.vmem [shape: f32[2], index: 0, kind: input, shape index: {}]   ;;  %s25_s1 = inlined_call_operand.vmem [shape: f32[2], index: 1, kind: output, shape index: {}]  }
   0x1   :  { %v2_v0 = vld [vmem:[%s24_s0] sm:$0x1] }
   0x2   :  { %v5_v1 = vxor.u32 2147483648, %v2_v0 }
   0x4   :  { %7 = vst [vmem:[%s25_s1] sm:$0x1] %v5_v1 }

// kernel: dndt_forward.2
= control target key start
LH: loop header
LB: loop body
LE: loop exit
PB: predicated region body
PF: predicated region fallthrough
CT: control target
= control target key end

     0   :  { %s1000_s0 = inlined_call_operand.vmem [shape: f32[3,3], index: 0, kind: input, shape index: {}]   ;;  %s1001_s1 = inlined_call_operand.vmem [shape: f32[12,3], index: 1, kind: input, shape index: {}]   ;;  %s1002_s2 = inlined_call_operand.vmem [shape: f32[1,3,16,128], index: 2, kind: input, shape index: {}]   ;;  %s1003_s3 = inlined_call_operand.vmem [shape: f32[3,16,128], index: 3, kind: output, shape index: {}]  }
   0x1   :  { %1054 = sst [smem:[#allocation34_spill]] %s1003_s3 }
   0x2   :  { %8 = vsyncpa [#allocation3], 0  ;;  %s18_s14 = sshll.u32 %s1000_s0, 4  ;;  %s19_s14 = int_to_ptr.vmem [resolvable:$true] %s18_s14 }
   0x3   :  { %9 = vsyncpa [#allocation5], 0  ;;  %s27_s17 = sshll.u32 %s1001_s1, 4  ;;  %s554_s18 = scalar_lea.vmem %s19_s14, 64  ;;  %s28_s17 = int_to_ptr.vmem [resolvable:$true] %s27_s17 }
   0x4   :  { %p555_p0 = scmp.ne.s32.totalorder %s19_s14, %s554_s18  ;;  %p559_p1 = scmp.lt.s32.totalorder %s19_s14, %s19_s14 }
   0x5   :  { %p560_p2 = scmp.lt.s32.totalorder %s554_s18, %s554_s18 }
   0x7   :  { %p561_p3 = por %p560_p2, %p559_p1 }
   0x9   :  { %p562_p4 = pnand %p561_p3, %p555_p0 }
   0xb   :  { %565 = shalt.err (!%p562_p4)
}
   0xc   :  { %s582_s19 = smov [#allocation2]   ;;  %s566_s20 = scalar_lea.vmem %s28_s17, 256 }
   0xd   :  { %21 = dma.vmem_to_smem %s19_s14, 64, %s582_s19, [#allocation3]  }
   0xe   :  { %p567_p5 = scmp.ne.s32.totalorder %s28_s17, %s566_s20  ;;  %p571_p6 = scmp.lt.s32.totalorder %s28_s17, %s28_s17 }
   0xf   :  { %p572_p7 = scmp.lt.s32.totalorder %s566_s20, %s566_s20 }
  0x11   :  { %p573_p8 = por %p572_p7, %p571_p6 }
  0x13   :  { %p574_p9 = pnand %p573_p8, %p567_p5 }
  0x15   :  { %577 = shalt.err (!%p574_p9)
}
  0x16   :  { %s583_s0 = smov [#allocation4]   ;;  %s584_s21 = smov 128  }
  0x17   :  { %s585_s1 = smov 8  }
  0x18   :  { %33 = dma.vmem_to_smem %s28_s17, 256, %s583_s0, [#allocation5], %s584_s21, %s584_s21, %s585_s1  }
  0x19   :  { %578 = dma.done.wait [#allocation3], 64  }
  0x1a   :  { %579 = vsyncadd [#allocation3], 4294967232 }
  0x1b   :  { %580 = dma.done.wait [#allocation5], 256  }
  0x1c   :  { %581 = vsyncadd [#allocation5], 4294967040 }
  0x1d   :  { %40 = sfence }
  0x1e   :  { %v41_v0 = vld [vmem:[%s1002_s2] sm:$0xff]  ;;  %s615_s24 = sld [smem:[#allocation2]]  ;;  %s617_s25 = sld [smem:[#allocation2 + $0x1]]  ;;  %v468_v1 = vld [vmem:[%s1002_s2 + $0x10] sm:$0xff]  ;;  %v467_v4 = vld [vmem:[%s1002_s2 + $0x8] sm:$0xff] }
  0x1f   :  { %s622_s28 = sld [smem:[#allocation2 + $0x80]]  ;;  %s624_s29 = sld [smem:[#allocation2 + $0x81]]  ;;  %v470_v2 = vld [vmem:[%s1002_s2 + $0x20] sm:$0xff]  ;;  %v113_v3 = vmul.f32 10.0, %v41_v0  ;;  %v116_v5 = vmul.f32 20.0, %v41_v0  ;;  %v130_v6 = vmul.f32 10.0, %v468_v1 }
  0x20   :  { %s629_s5 = sld [smem:[#allocation2 + $0x82]]  ;;  %s631_s6 = sld [smem:[#allocation2 + $0x100]]  ;;  %v133_v7 = vmul.f32 20.0, %v468_v1  ;;  %v136_v9 = vmul.f32 30.0, %v468_v1  ;;  %v162_v10 = vmul.f32 10.0, %v470_v2  ;;  %v165_v13 = vmul.f32 20.0, %v470_v2 }
  0x21   :  { %s636_s9 = sld [smem:[#allocation2 + $0x101]]  ;;  %s638_s10 = sld [smem:[#allocation4]]  ;;  %v305_v14 = vmul.f32 10.0, %v467_v4  ;;  %v469_v15 = vld [vmem:[%s1002_s2 + $0x18] sm:$0xff]  ;;  %v307_v19 = vmul.f32 20.0, %v467_v4 }
  0x22   :  { %s640_s11 = sld [smem:[#allocation4 + $0x1]]  ;;  %s642_s12 = sld [smem:[#allocation4 + $0x2]]  ;;  %v688_v30 = vmul.f32 10.0, %v469_v15  ;;  %v696_v34 = vmul.f32 20.0, %v469_v15  ;;  %v704_v38 = vmul.f32 30.0, %v469_v15 }
  0x23   :  { %s644_s13 = sld [smem:[#allocation4 + $0x80]]  ;;  %s646_s14 = sld [smem:[#allocation4 + $0x81]] }
  0x24   :  { %v114_v8 = vstv %s615_s24  ;;  %s649_s15 = sld [smem:[#allocation4 + $0x82]]  ;;  %s651_s16 = sld [smem:[#allocation4 + $0x100]]  ;;  %v117_v12 = vstv %s617_s25 }
  0x25   :  { %v115_v11 = vadd.f32 %v114_v8, %v113_v3  ;;  %s657_s19 = sld [smem:[#allocation4 + $0x101]]  ;;  %s659_s20 = sld [smem:[#allocation4 + $0x102]]  ;;  %v118_v16 = vadd.f32 %v117_v12, %v116_v5  ;;  %v131_v17 = vstv %s622_s28  ;;  %v134_v18 = vstv %s624_s29 }
  0x26   :  { %1055 = sst [smem:[#allocation9_spill]] %s631_s6  ;;  %s665_s21 = sld [smem:[#allocation4 + $0x181]]  ;;  %v132_v20 = vadd.f32 %v131_v17, %v130_v6  ;;  %v135_v21 = vadd.f32 %v134_v18, %v133_v7  ;;  %v137_v22 = vstv %s629_s5  ;;  %v163_v23 = vstv %s631_s6 }
  0x27   :  { %1056 = sst [smem:[#allocation10_spill]] %s636_s9  ;;  %s663_s0 = sld [smem:[#allocation4 + $0x180]]  ;;  %v119_v24 = vmax.f32 %v115_v11, %v118_v16  ;;  %v138_v25 = vadd.f32 %v137_v22, %v136_v9  ;;  %v164_v26 = vadd.f32 %v163_v23, %v162_v10  ;;  %v1033_v27 = vstv %s636_s9 }
  0x28   :  { %1057 = sst [smem:[#allocation11_spill]] %s638_s10  ;;  %s675_s22 = sld [smem:[#allocation4 + $0x200]]  ;;  %v139_v28 = vmax.f32 %v132_v20, %v135_v21  ;;  %v167_v29 = vadd.f32 %v1033_v27, %v165_v13  ;;  %v694_v33 = vadd.f32 %v305_v14, %v114_v8  ;;  %v702_v37 = vadd.f32 %v307_v19, %v117_v12  ;;  %v471_v8 = vld [vmem:[%s1002_s2 + $0x28] sm:$0xff] }
  0x29   :  { %1058 = sst [smem:[#allocation12_spill]] %s640_s11  ;;  %s673_s1 = sld [smem:[#allocation4 + $0x182]]  ;;  %v120_v31 = vsub.f32 %v115_v11, %v119_v24  ;;  %v123_v32 = vsub.f32 %v118_v16, %v119_v24  ;;  %v1040_v40 = vstv %s638_s10  ;;  %v1041_v41 = vstv %s640_s11 }
  0x2a   :  { %1059 = sst [smem:[#allocation13_spill]] %s642_s12  ;;  %s682_s23 = sld [smem:[#allocation4 + $0x201]]  ;;  %v140_v35 = vmax.f32 %v139_v28, %v138_v25  ;;  %v168_v36 = vmax.f32 %v164_v26, %v167_v29  ;;  %v1042_v42 = vstv %s642_s12  ;;  %v185_v48 = vstv %s644_s13 }
  0x2b   :  { %1060 = sst [smem:[#allocation14_spill]] %s644_s13  ;;  %s684_s24 = sld [smem:[#allocation4 + $0x202]]  ;;  %v121_v39 = vmul.f32 1.442695, %v120_v31  ;;  %v124_v43 = vmul.f32 1.442695, %v123_v32  ;;  %v1043_v49 = vstv %s646_s14  ;;  %v191_v52 = vstv %s649_s15 }
  0x2c   :  { %1061 = sst [smem:[#allocation15_spill]] %s646_s14  ;;  %s690_s25 = sld [smem:[#allocation4 + $0x280]]  ;;  %v141_v44 = vsub.f32 %v132_v20, %v140_v35  ;;  %v144_v45 = vsub.f32 %v135_v21, %v140_v35  ;;  %v147_v46 = vsub.f32 %v138_v25, %v140_v35  ;;  %v169_v47 = vsub.f32 %v164_v26, %v168_v36 }
  0x2d   :  { %1062 = sst [smem:[#allocation16_spill]] %s649_s15  ;;  %s692_s26 = sld [smem:[#allocation4 + $0x281]]  ;;  %522 = vpow2.f32 %v121_v39  ;;  %v172_v51 = vsub.f32 %v167_v29, %v168_v36  ;;  %v195_v54 = vstv %s651_s16  ;;  %v198_v55 = vstv %s657_s19 }
  0x2e   :  { %1063 = sst [smem:[#allocation17_spill]] %s657_s19  ;;  %s698_s27 = sld [smem:[#allocation4 + $0x282]]  ;;  %524 = vpow2.f32 %v124_v43  ;;  %v142_v50 = vmul.f32 1.442695, %v141_v44  ;;  %v145_v53 = vmul.f32 1.442695, %v144_v45  ;;  %v201_v56 = vstv %s659_s20 }
  0x2f   :  { %1064 = sst [smem:[#allocation18_spill]] %s659_s20  ;;  %s700_s30 = sld [smem:[#allocation4 + $0x300]]  ;;  %v148_v57 = vmul.f32 1.442695, %v147_v46  ;;  %v1044_v58 = vstv %s663_s0  ;;  %v208_v59 = vstv %s665_s21  ;;  %v170_v60 = vmul.f32 1.442695, %v169_v47 }
  0x30   :  { %1065 = sst [smem:[#allocation19_spill]] %s665_s21  ;;  %s706_s4 = sld [smem:[#allocation4 + $0x301]]  ;;  %526 = vpow2.f32 %v142_v50  ;;  %v211_v61 = vstv %s673_s1  ;;  %v1046_v62 = vstv %s675_s22  ;;  %v173_v63 = vmul.f32 1.442695, %v172_v51 }
  0x31   :  { %1066 = sst [smem:[#allocation20_spill]] %s675_s22  ;;  %s708_s7 = sld [smem:[#allocation4 + $0x302]]  ;;  %528 = vpow2.f32 %v145_v53  ;;  %v1045_v0 = vstv %s682_s23  ;;  %v221_v1 = vstv %s684_s24  ;;  %v309_v11 = vmax.f32 %v694_v33, %v702_v37 }
  0x32   :  { %1067 = sst [smem:[#allocation21_spill]] %s682_s23  ;;  %s713_s8 = sld [smem:[#allocation4 + $0x380]]  ;;  %530 = vpow2.f32 %v148_v57  ;;  %v225_v2 = vstv %s690_s25  ;;  %v771_v12 = vadd.f32 %v688_v30, %v131_v17  ;;  %v778_v15 = vadd.f32 %v696_v34, %v134_v18 }
  0x33   :  { %s715_s17 = sld [smem:[#allocation4 + $0x381]]  ;;  %s717_s18 = sld [smem:[#allocation4 + $0x382]]  ;;  %532 = vpow2.f32 %v170_v60  ;;  %v228_v3 = vstv %s692_s26  ;;  %v783_v16 = vadd.f32 %v704_v38, %v137_v22  ;;  %v310_v24 = vsub.f32 %v694_v33, %v309_v11 }
  0x34   :  { %s719_s3 = sld [smem:[#allocation4 + $0x400]]  ;;  %s723_s9 = sld [smem:[#allocation4 + $0x401]]  ;;  %v231_v4 = vstv %s698_s27  ;;  %534 = vpow2.f32 %v173_v63  ;;  %v313_v28 = vsub.f32 %v702_v37, %v309_v11  ;;  %v326_v18 = vmax.f32 %v771_v12, %v778_v15 }
  0x35   :  { %s725_s12 = sld [smem:[#allocation4 + $0x402]]  ;;  %s728_s11 = sld [smem:[#allocation4 + $0x480]]  ;;  %v235_v5 = vstv %s700_s30  ;;  %v349_v29 = vmul.f32 10.0, %v471_v8  ;;  %v803_v45 = vmul.f32 1.442695, %v310_v24 }
  0x36   :  { %s730_s10 = sld [smem:[#allocation4 + $0x481]]  ;;  %s735_s14 = sld [smem:[#allocation4 + $0x482]]  ;;  %v238_v6 = vstv %s706_s4  ;;  %v800_v33 = vmax.f32 %v326_v18, %v783_v16  ;;  %v805_v51 = vmul.f32 1.442695, %v313_v28  ;;  %v811_v18 = vmul.f32 20.0, %v471_v8 }
  0x37   :  { %1068 = sst [smem:[#allocation22_spill]] %s708_s7  ;;  %s737_s13 = sld [smem:[#allocation4 + $0x500]]  ;;  %v241_v7 = vstv %s708_s7  ;;  %v523_v19 = vpop.eup %522  ;;  %v809_v53 = vadd.f32 %v349_v29, %v163_v23 }
  0x38   :  { %1069 = sst [smem:[#allocation23_spill]] %s713_s8  ;;  %s741_s15 = sld [smem:[#allocation4 + $0x501]]  ;;  %v245_v9 = vstv %s713_s8  ;;  %v525_v25 = vpop.eup %524 }
  0x39   :  { %1070 = sst [smem:[#allocation24_spill]] %s715_s17  ;;  %s743_s6 = sld [smem:[#allocation4 + $0x502]]  ;;  %v248_v10 = vstv %s715_s17  ;;  %v251_v13 = vstv %s717_s18  ;;  %v126_v35 = vadd.f32 %v525_v25, %v523_v19 }
  0x3a   :  { %1071 = sst [smem:[#allocation25_spill]] %s717_s18  ;;  %s749_s19 = sld [smem:[#allocation4 + $0x581]]  ;;  %v255_v14 = vstv %s719_s3  ;;  %v258_v20 = vstv %s723_s9  ;;  %v527_v34 = vpop.eup %526 }
  0x3b   :  { %1072 = sst [smem:[#allocation26_spill]] %s719_s3  ;;  %s747_s20 = sld [smem:[#allocation4 + $0x580]]  ;;  %v261_v21 = vstv %s725_s12  ;;  %v265_v17 = vstv %s728_s11  ;;  %v529_v39 = vpop.eup %528  ;;  %v153_v43 = vmul.f32 %v527_v34, %v523_v19  ;;  %v156_v44 = vmul.f32 %v527_v34, %v525_v25 }
  0x3c   :  { %1073 = sst [smem:[#allocation27_spill]] %s723_s9  ;;  %v268_v26 = vstv %s730_s10  ;;  %v271_v30 = vstv %s735_s14  ;;  %v531_v46 = vpop.eup %530  ;;  %v150_v47 = vadd.f32 %v529_v39, %v527_v34  ;;  %v154_v50 = vmul.f32 %v529_v39, %v523_v19  ;;  %s1082_s29 = sld [smem:[#allocation12_spill]] }
  0x3d   :  { %1074 = sst [smem:[#allocation28_spill]] %s737_s13  ;;  %s753_s21 = sld [smem:[#allocation4 + $0x582]]  ;;  %v533_v57 = vpop.eup %532  ;;  %v155_v60 = vmul.f32 %v531_v46, %v523_v19  ;;  %v157_v63 = vmul.f32 %v529_v39, %v525_v25  ;;  %v158_v11 = vmul.f32 %v531_v46, %v525_v25 }
  0x3e   :  { %1075 = sst [smem:[#allocation29_spill]] %s741_s15  ;;  %s1081_s28 = sld [smem:[#allocation11_spill]]  ;;  %v535_v24 = vpop.eup %534  ;;  %v151_v34 = vadd.f32 %v531_v46, %v150_v47  ;;  %v177_v28 = vmul.f32 %v533_v57, %v153_v43  ;;  %v194_v27 = vmul.f32 %v533_v57, %v154_v50  ;;  %v234_v37 = vmul.f32 %v533_v57, %v156_v44 }
  0x3f   :  { %1076 = sst [smem:[#allocation30_spill]] %s743_s6  ;;  %s1083_s5 = sld [smem:[#allocation13_spill]]  ;;  %v175_v29 = vadd.f32 %v535_v24, %v533_v57  ;;  %v184_v19 = vmul.f32 %v535_v24, %v153_v43  ;;  %v204_v39 = vmul.f32 %v535_v24, %v154_v50  ;;  %v214_v47 = vmul.f32 %v533_v57, %v155_v60 }
  0x40   :  { %1078 = sst [smem:[#allocation32_spill]] %s749_s19  ;;  %s1085_s23 = sld [smem:[#allocation15_spill]]  ;;  %v179_v8 = vmul.f32 %v1040_v40, %v177_v28  ;;  %v181_v25 = vmul.f32 %v1041_v41, %v177_v28  ;;  %v183_v46 = vmul.f32 %v1042_v42, %v177_v28  ;;  %v196_v50 = vmul.f32 %v195_v54, %v194_v27 }
  0x41   :  { %1077 = sst [smem:[#allocation31_spill]] %s747_s20  ;;  %s1090_s6 = sld [smem:[#allocation20_spill]]  ;;  %v186_v38 = vmul.f32 %v185_v48, %v184_v19  ;;  %v189_v23 = vmul.f32 %v1043_v49, %v184_v19  ;;  %v192_v43 = vmul.f32 %v191_v52, %v184_v19  ;;  %v152_v36 = vmul.f32 %v151_v34, %v126_v35 }
  0x42   :  { %s1091_s15 = sld [smem:[#allocation21_spill]]  ;;  %v199_v40 = vmul.f32 %v198_v55, %v194_v27  ;;  %v202_v41 = vmul.f32 %v201_v56, %v194_v27  ;;  %v206_v32 = vmul.f32 %v1044_v58, %v204_v39  ;;  %v209_v22 = vmul.f32 %v208_v59, %v204_v39  ;;  %s1093_s17 = sld [smem:[#allocation30_spill]] }
  0x43   :  { %1079 = sst [smem:[#allocation33_spill]] %s753_s21  ;;  %v187_v28 = vadd.f32 %v186_v38, %v179_v8  ;;  %v190_v42 = vadd.f32 %v189_v23, %v181_v25  ;;  %v193_v31 = vadd.f32 %v192_v43, %v183_v46  ;;  %v212_v49 = vmul.f32 %v211_v61, %v204_v39  ;;  %s1092_s8 = sld [smem:[#allocation29_spill]] }
  0x44   :  { %v216_v19 = vmul.f32 %v1046_v62, %v214_v47  ;;  %v219_v35 = vmul.f32 %v1045_v0, %v214_v47  ;;  %v222_v34 = vmul.f32 %v221_v1, %v214_v47  ;;  %v224_v23 = vmul.f32 %v535_v24, %v155_v60  ;;  %s1094_s7 = sld [smem:[#allocation31_spill]]  ;;  %s1095_s18 = sld [smem:[#allocation32_spill]] }
  0x45   :  { %v197_v27 = vadd.f32 %v196_v50, %v187_v28  ;;  %v200_v58 = vadd.f32 %v199_v40, %v190_v42  ;;  %v203_v38 = vadd.f32 %v202_v41, %v193_v31  ;;  %v176_v8 = vmul.f32 %v175_v29, %v152_v36  ;;  %s1096_s3 = sld [smem:[#allocation33_spill]]  ;;  %s1097_s9 = sld [smem:[#allocation10_spill]] }
  0x46   :  { %v236_v25 = vmul.f32 %v235_v5, %v234_v37  ;;  %v244_v39 = vmul.f32 %v535_v24, %v156_v44  ;;  %v331_v46 = vsub.f32 %v778_v15, %v800_v33  ;;  %v226_v47 = vmul.f32 %v225_v2, %v224_v23  ;;  %s1120_s20 = sld [smem:[#allocation28_spill]]  ;;  %s1122_s21 = sld [smem:[#allocation30_spill]] }
  0x47   :  { %v207_v43 = vadd.f32 %v206_v32, %v197_v27  ;;  %v210_v0 = vadd.f32 %v209_v22, %v200_v58  ;;  %v213_v62 = vadd.f32 %v212_v49, %v203_v38  ;;  %v229_v50 = vmul.f32 %v228_v3, %v224_v23  ;;  %s1123_s1 = sld [smem:[#allocation31_spill]]  ;;  %s1124_s24 = sld [smem:[#allocation32_spill]] }
  0x48   :  { %v232_v40 = vmul.f32 %v231_v4, %v224_v23  ;;  %v239_v41 = vmul.f32 %v238_v6, %v234_v37  ;;  %v242_v42 = vmul.f32 %v241_v7, %v234_v37  ;;  %v246_v15 = vmul.f32 %v245_v9, %v244_v39  ;;  %s1125_s25 = sld [smem:[#allocation33_spill]] }
  0x49   :  { %v217_v31 = vadd.f32 %v216_v19, %v207_v43  ;;  %v220_v36 = vadd.f32 %v219_v35, %v210_v0  ;;  %v223_v44 = vadd.f32 %v222_v34, %v213_v62  ;;  %v249_v49 = vmul.f32 %v248_v10, %v244_v39 }
  0x4a   :  { %v252_v58 = vmul.f32 %v251_v13, %v244_v39  ;;  %v254_v22 = vmul.f32 %v533_v57, %v157_v63  ;;  %v264_v32 = vmul.f32 %v535_v24, %v157_v63  ;;  %v274_v27 = vmul.f32 %v533_v57, %v158_v11 }
  0x4b   :  { %v227_v60 = vadd.f32 %v226_v47, %v217_v31  ;;  %v230_v29 = vadd.f32 %v229_v50, %v220_v36  ;;  %v233_v28 = vadd.f32 %v232_v40, %v223_v44  ;;  %v284_v37 = vmul.f32 %v535_v24, %v158_v11 }
  0x4c   :  { %v256_v0 = vmul.f32 %v255_v14, %v254_v22  ;;  %v259_v62 = vmul.f32 %v258_v20, %v254_v22  ;;  %536 = vrcp.f32 %v176_v8  ;;  %v262_v38 = vmul.f32 %v261_v21, %v254_v22 }
  0x4d   :  { %v237_v19 = vadd.f32 %v236_v25, %v227_v60  ;;  %v240_v35 = vadd.f32 %v239_v41, %v230_v29  ;;  %v243_v34 = vadd.f32 %v242_v42, %v233_v28  ;;  %v266_v63 = vmul.f32 %v265_v17, %v264_v32 }
  0x4e   :  { %v269_v57 = vmul.f32 %v268_v26, %v264_v32  ;;  %v272_v23 = vmul.f32 %v271_v30, %v264_v32  ;;  %538 = vpow2.f32 %v803_v45  ;;  %v1098_v8 = vstv %s737_s13 }
  0x4f   :  { %v247_v39 = vadd.f32 %v246_v15, %v237_v19  ;;  %v250_v11 = vadd.f32 %v249_v49, %v240_v35  ;;  %v253_v24 = vadd.f32 %v252_v58, %v243_v34  ;;  %v276_v25 = vmul.f32 %v1098_v8, %v274_v27 }
  0x50   :  { %v1099_v43 = vstv %s1092_s8  ;;  %v1100_v50 = vstv %s1093_s17  ;;  %v1101_v41 = vstv %s1094_s7  ;;  %v1102_v31 = vsub.f32 %v771_v12, %v800_v33 }
  0x51   :  { %v279_v47 = vmul.f32 %v1099_v43, %v274_v27  ;;  %v282_v40 = vmul.f32 %v1100_v50, %v274_v27  ;;  %v286_v42 = vmul.f32 %v1101_v41, %v284_v37  ;;  %v257_v44 = vadd.f32 %v256_v0, %v247_v39 }
  0x52   :  { %v329_v36 = vmul.f32 1.442695, %v1102_v31  ;;  %v260_v22 = vadd.f32 %v259_v62, %v250_v11  ;;  %v263_v32 = vadd.f32 %v262_v38, %v253_v24  ;;  %v332_v45 = vmul.f32 1.442695, %v331_v46 }
  0x53   :  { %v1103_v60 = vstv %s1095_s18  ;;  %v1104_v49 = vstv %s1096_s3  ;;  %v334_v29 = vsub.f32 %v783_v16, %v800_v33  ;;  %v1105_v28 = vstv %s1097_s9  ;;  %s1106_s18 = sld [smem:[#allocation34_spill]] }
  0x54   :  { %v289_v15 = vmul.f32 %v1103_v60, %v284_v37  ;;  %v292_v58 = vmul.f32 %v1104_v49, %v284_v37  ;;  %v352_v27 = vadd.f32 %v811_v18, %v1105_v28  ;;  %v267_v19 = vadd.f32 %v266_v63, %v257_v44 }
  0x55   :  { %v270_v35 = vadd.f32 %v269_v57, %v260_v22  ;;  %v273_v34 = vadd.f32 %v272_v23, %v263_v32  ;;  %540 = vpow2.f32 %v329_v36  ;;  %v335_v12 = vmul.f32 1.442695, %v334_v29 }
  0x56   :  { %542 = vpow2.f32 %v332_v45  ;;  %v353_v0 = vmax.f32 %v809_v53, %v352_v27  ;;  %v277_v62 = vadd.f32 %v276_v25, %v267_v19  ;;  %v537_v39 = vpop.eup %536  ;;  %v1107_v28 = vstv %s1081_s28 }
  0x57   :  { %v280_v46 = vadd.f32 %v279_v47, %v270_v35  ;;  %v283_v38 = vadd.f32 %v282_v40, %v273_v34  ;;  %544 = vpow2.f32 %v335_v12  ;;  %v1108_v19 = vstv %s1082_s29 }
  0x58   :  { %v354_v37 = vsub.f32 %v809_v53, %v353_v0  ;;  %v357_v11 = vsub.f32 %v352_v27, %v353_v0  ;;  %v287_v16 = vadd.f32 %v286_v42, %v277_v62  ;;  %546 = vpow2.f32 %v805_v51  ;;  %v539_v18 = vpop.eup %538 }
  0x59   :  { %v290_v33 = vadd.f32 %v289_v15, %v280_v46  ;;  %v293_v24 = vadd.f32 %v292_v58, %v283_v38  ;;  %v1109_v34 = vstv %s1083_s5  ;;  %v1110_v46 = vstv %s1085_s23 }
  0x5a   :  { %v355_v63 = vmul.f32 1.442695, %v354_v37  ;;  %v358_v57 = vmul.f32 1.442695, %v357_v11  ;;  %v295_v23 = vmul.f32 %v537_v39, %v287_v16 }
  0x5b   :  { %v297_v8 = vmul.f32 %v537_v39, %v290_v33  ;;  %v300_v43 = vmul.f32 %v537_v39, %v293_v24  ;;  %v1111_v33 = vstv %s663_s0  ;;  %s1121_s0 = sld [smem:[#allocation29_spill]] }
  0x5c   :  { %548 = vpow2.f32 %v355_v63  ;;  %296 = vst [vmem:[%s1106_s18] sm:$0xff] %v295_v23 }
  0x5d   :  { %513 = vst [vmem:[%s1106_s18 + $0x10] sm:$0xff] %v297_v8  ;;  %514 = vst [vmem:[%s1106_s18 + $0x20] sm:$0xff] %v300_v43  ;;  %550 = vpow2.f32 %v358_v57  ;;  %v1112_v8 = vstv %s1090_s6  ;;  %v1113_v43 = vstv %s1091_s15 }
  0x5f   :  { %v541_v51 = vpop.eup %540 }
  0x60   :  { %v543_v53 = vpop.eup %542  ;;  %v340_v50 = vmul.f32 %v541_v51, %v539_v18 }
  0x61   :  { %v545_v25 = vpop.eup %544  ;;  %v341_v40 = vmul.f32 %v543_v53, %v539_v18  ;;  %v337_v41 = vadd.f32 %v543_v53, %v541_v51 }
  0x62   :  { %v547_v47 = vpop.eup %546  ;;  %v342_v42 = vmul.f32 %v545_v25, %v539_v18 }
  0x63   :  { %v316_v36 = vadd.f32 %v547_v47, %v539_v18  ;;  %v343_v22 = vmul.f32 %v547_v47, %v541_v51  ;;  %v344_v32 = vmul.f32 %v547_v47, %v543_v53  ;;  %v338_v15 = vadd.f32 %v545_v25, %v337_v41 }
  0x66   :  { %v549_v31 = vpop.eup %548 }
  0x67   :  { %v910_v44 = vpop.eup %550  ;;  %v362_v45 = vmul.f32 %v549_v31, %v340_v50  ;;  %v373_v60 = vmul.f32 %v549_v31, %v341_v40  ;;  %v387_v29 = vmul.f32 %v549_v31, %v342_v42 }
  0x68   :  { %v366_v49 = vmul.f32 %v910_v44, %v340_v50  ;;  %v380_v58 = vmul.f32 %v910_v44, %v341_v40  ;;  %v394_v0 = vmul.f32 %v910_v44, %v342_v42 }
  0x69   :  { %v363_v27 = vmul.f32 %v362_v45, %v1107_v28  ;;  %v364_v35 = vmul.f32 %v362_v45, %v1108_v19  ;;  %v365_v12 = vmul.f32 %v362_v45, %v1109_v34  ;;  %v374_v37 = vmul.f32 %v373_v60, %v195_v54 }
  0x6a   :  { %v367_v62 = vmul.f32 %v366_v49, %v185_v48  ;;  %v369_v38 = vmul.f32 %v366_v49, %v1110_v46  ;;  %v371_v39 = vmul.f32 %v366_v49, %v191_v52  ;;  %v376_v11 = vmul.f32 %v373_v60, %v198_v55 }
  0x6b   :  { %v378_v16 = vmul.f32 %v373_v60, %v201_v56  ;;  %v381_v24 = vmul.f32 %v380_v58, %v1111_v33  ;;  %v383_v18 = vmul.f32 %v380_v58, %v208_v59  ;;  %v385_v23 = vmul.f32 %v380_v58, %v211_v61 }
  0x6c   :  { %v368_v63 = vadd.f32 %v367_v62, %v363_v27  ;;  %v370_v48 = vadd.f32 %v369_v38, %v364_v35  ;;  %v372_v57 = vadd.f32 %v371_v39, %v365_v12  ;;  %v339_v52 = vmul.f32 %v338_v15, %v316_v36 }
  0x6d   :  { %v388_v54 = vmul.f32 %v387_v29, %v1112_v8  ;;  %v390_v55 = vmul.f32 %v387_v29, %v1113_v43  ;;  %v401_v56 = vmul.f32 %v549_v31, %v343_v22  ;;  %v392_v40 = vmul.f32 %v387_v29, %v221_v1 }
  0x6e   :  { %v375_v51 = vadd.f32 %v374_v37, %v368_v63  ;;  %v377_v53 = vadd.f32 %v376_v11, %v370_v48  ;;  %v379_v50 = vadd.f32 %v378_v16, %v372_v57  ;;  %v360_v59 = vadd.f32 %v910_v44, %v549_v31 }
  0x6f   :  { %v395_v41 = vmul.f32 %v394_v0, %v225_v2  ;;  %v397_v61 = vmul.f32 %v394_v0, %v228_v3  ;;  %v399_v42 = vmul.f32 %v394_v0, %v231_v4  ;;  %v408_v15 = vmul.f32 %v910_v44, %v343_v22 }
  0x70   :  { %v382_v36 = vadd.f32 %v381_v24, %v375_v51  ;;  %v384_v45 = vadd.f32 %v383_v18, %v377_v53  ;;  %v386_v60 = vadd.f32 %v385_v23, %v379_v50  ;;  %v345_v49 = vmul.f32 %v547_v47, %v545_v25 }
  0x71   :  { %v402_v1 = vmul.f32 %v401_v56, %v235_v5  ;;  %v404_v58 = vmul.f32 %v401_v56, %v238_v6  ;;  %v415_v2 = vmul.f32 %v549_v31, %v344_v32  ;;  %v406_v4 = vmul.f32 %v401_v56, %v241_v7 }
  0x72   :  { %v389_v29 = vadd.f32 %v388_v54, %v382_v36  ;;  %v391_v28 = vadd.f32 %v390_v55, %v384_v45  ;;  %v393_v3 = vadd.f32 %v392_v40, %v386_v60  ;;  %v361_v27 = vmul.f32 %v360_v59, %v339_v52 }
  0x73   :  { %v409_v22 = vmul.f32 %v408_v15, %v245_v9  ;;  %v411_v25 = vmul.f32 %v408_v15, %v248_v10  ;;  %v422_v5 = vmul.f32 %v910_v44, %v344_v32  ;;  %v413_v35 = vmul.f32 %v408_v15, %v251_v13 }
  0x74   :  { %v396_v47 = vadd.f32 %v395_v41, %v389_v29  ;;  %v398_v19 = vadd.f32 %v397_v61, %v391_v28  ;;  %v400_v6 = vadd.f32 %v399_v42, %v393_v3  ;;  %v416_v34 = vmul.f32 %v415_v2, %v255_v14 }
  0x75   :  { %v418_v7 = vmul.f32 %v415_v2, %v258_v20  ;;  %v429_v12 = vmul.f32 %v549_v31, %v345_v49  ;;  %v420_v10 = vmul.f32 %v415_v2, %v261_v21  ;;  %v423_v32 = vmul.f32 %v422_v5, %v265_v17 }
  0x76   :  { %v403_v0 = vadd.f32 %v402_v1, %v396_v47  ;;  %v405_v62 = vadd.f32 %v404_v58, %v398_v19  ;;  %v407_v9 = vadd.f32 %v406_v4, %v400_v6  ;;  %v425_v46 = vmul.f32 %v422_v5, %v268_v26 }
  0x77   :  { %v427_v13 = vmul.f32 %v422_v5, %v271_v30  ;;  %v436_v14 = vmul.f32 %v910_v44, %v345_v49  ;;  %552 = vrcp.f32 %v361_v27  ;;  %v1126_v39 = vstv %s1120_s20 }
  0x78   :  { %v410_v38 = vadd.f32 %v409_v22, %v403_v0  ;;  %v412_v20 = vadd.f32 %v411_v25, %v405_v62  ;;  %v414_v31 = vadd.f32 %v413_v35, %v407_v9  ;;  %v430_v37 = vmul.f32 %v429_v12, %v1126_v39 }
  0x79   :  { %v1127_v11 = vstv %s1121_s0  ;;  %v1128_v18 = vstv %s1122_s21  ;;  %v1129_v63 = vstv %s1123_s1  ;;  %v1130_v48 = vstv %s1124_s24 }
  0x7a   :  { %v432_v16 = vmul.f32 %v429_v12, %v1127_v11  ;;  %v417_v33 = vadd.f32 %v416_v34, %v410_v38  ;;  %v419_v21 = vadd.f32 %v418_v7, %v412_v20  ;;  %v421_v24 = vadd.f32 %v420_v10, %v414_v31 }
  0x7b   :  { %v434_v17 = vmul.f32 %v429_v12, %v1128_v18  ;;  %v437_v26 = vmul.f32 %v436_v14, %v1129_v63  ;;  %v439_v30 = vmul.f32 %v436_v14, %v1130_v48  ;;  %v1131_v52 = vstv %s1125_s25 }
  0x7c   :  { %v424_v57 = vadd.f32 %v423_v32, %v417_v33  ;;  %v426_v44 = vadd.f32 %v425_v46, %v419_v21  ;;  %v428_v23 = vadd.f32 %v427_v13, %v421_v24  ;;  %v441_v8 = vmul.f32 %v436_v14, %v1131_v52 }
  0x7e   :  { %v431_v54 = vadd.f32 %v430_v37, %v424_v57  ;;  %v433_v43 = vadd.f32 %v432_v16, %v426_v44  ;;  %v435_v55 = vadd.f32 %v434_v17, %v428_v23 }
  0x80   :  { %v438_v56 = vadd.f32 %v437_v26, %v431_v54  ;;  %v440_v51 = vadd.f32 %v439_v30, %v433_v43  ;;  %v442_v53 = vadd.f32 %v441_v8, %v435_v55 }
  0x81   :  { %v553_v50 = vpop.eup %552 }
  0x82   :  { %v444_v40 = vmul.f32 %v553_v50, %v438_v56  ;;  %v447_v59 = vmul.f32 %v553_v50, %v440_v51  ;;  %v450_v41 = vmul.f32 %v553_v50, %v442_v53 }
  0x84   :  { %515 = vst [vmem:[%s1106_s18 + $0x8] sm:$0xff] %v444_v40  ;;  %516 = vst [vmem:[%s1106_s18 + $0x18] sm:$0xff] %v447_v59 }
  0x85   :  { %517 = vst [vmem:[%s1106_s18 + $0x28] sm:$0xff] %v450_v41 }
  0x86   :  { %457 = vsyncpa [#allocation3], 1 }
  0x87   :  { %458 = vsyncpa [#allocation5], 1 }

</bundles_post_ra>
